<compile_context>
chip_gen: v7x
topology: tpu7x:2x2x1
jax: 0.10.0
libtpu: 0.0.40
codegen_flags: <defaults>
</compile_context>

<pallas_src>
import functools

import jax
import jax.numpy as jnp
from jax.experimental import pallas as pl
from jax.experimental.pallas import tpu as pltpu


# --------------------------------------------------------------------------------------
# Kernels
# --------------------------------------------------------------------------------------
def _center_loss_group_kernel(f1_ref, f2_ref, out_ref, *, inv_chunk):
    """Tiled streaming path. Grid = (num_groups, num_tiles).

    f1_ref/f2_ref: (block_rows, D) input tiles of the current group.
    out_ref:       (1, 1, D) per-group output block, resident across the tile axis.
    """
    t = pl.program_id(1)
    nt = pl.num_programs(1)

    # Zero this group's resident output block at the start of the group.
    @pl.when(t == 0)
    def _():
        out_ref[...] = jnp.zeros_like(out_ref)

    # Pure VPU sub + XLU sublane-reduce; accumulate the (1, D) partial row-sum.
    diff = f1_ref[...].astype(jnp.float32) - f2_ref[...].astype(jnp.float32)
    out_ref[0] = out_ref[0] + jnp.sum(diff, axis=0, keepdims=True)

    # End of group: mean1 - mean2 = rowsum / chunk ; contribution = 0.25 * d^2.
    @pl.when(t == nt - 1)
    def _():
        dm = out_ref[0] * inv_chunk          # (1, D)
        out_ref[0] = 0.25 * dm * dm


def _center_loss_small_kernel(f1_ref, f2_ref, out_ref, *, num_groups, chunk, inv_chunk):
    """Small-problem fast path: whole (N, D) arrays resident in VMEM, one invocation."""
    diff = f1_ref[...].astype(jnp.float32) - f2_ref[...].astype(jnp.float32)  # (N, D)
    rows = []
    for g in range(num_groups):                      # static unrolled loop (num_groups=4)
        dg = jnp.sum(diff[g * chunk:(g + 1) * chunk, :], axis=0, keepdims=True) * inv_chunk
        rows.append(0.25 * dg * dg)                  # (1, D)
    out_ref[...] = jnp.concatenate(rows, axis=0)     # (num_groups, D)


# --------------------------------------------------------------------------------------
# Block sizing
# --------------------------------------------------------------------------------------
def _pick_block_rows(chunk, feat_dim, itemsize, sublane,
                     target_block_bytes=2 * 1024 * 1024,
                     max_block_bytes=8 * 1024 * 1024):
    """Bytes-based block sizing: largest multiple-of-`sublane` divisor of `chunk` whose
    block is ~target_block_bytes; guards against collapsing to a tiny block for awkward
    chunk sizes by searching upward (within max_block_bytes) if needed."""
    row_bytes = feat_dim * itemsize
    target_rows = max(sublane, int(target_block_bytes // max(row_bytes, 1)))
    if target_rows >= chunk:
        return chunk

    divisors = [r for r in range(sublane, chunk + 1, sublane) if chunk % r == 0]
    below = [r for r in divisors if r <= target_rows]
    best = max(below) if below else sublane

    # Perf-cliff guard: if the best divisor below the target is tiny, allow the smallest
    # divisor above the target that still fits the hard per-block byte cap.
    if best < max(sublane, target_rows // 4):
        above = [r for r in divisors
                 if r >= target_rows and r * row_bytes <= max_block_bytes]
        if above:
            best = min(above)
    return best


# --------------------------------------------------------------------------------------
# Wrapper
# --------------------------------------------------------------------------------------
def center_loss1(feat1, feat2, margin=0.1, dist_type="l2", num_groups=4,
                 block_rows=None, target_block_bytes=2 * 1024 * 1024,
                 small_bytes_limit=4 * 1024 * 1024):
    assert dist_type == "l2", "only the default l2 path is implemented"
    assert feat1.shape == feat2.shape and feat1.ndim == 2
    n, d = feat1.shape
    assert n % num_groups == 0
    chunk = n // num_groups
    itemsize = feat1.dtype.itemsize
    inv_chunk = 1.0 / chunk
    total_in_bytes = 2 * n * d * itemsize

    # ---- Small-problem fast path: one gridless invocation, everything in VMEM. ----
    if block_rows is None and total_in_bytes <= small_bytes_limit:
        kernel = functools.partial(_center_loss_small_kernel,
                                   num_groups=num_groups, chunk=chunk,
                                   inv_chunk=inv_chunk)
        out = pl.pallas_call(
            kernel,
            out_shape=jax.ShapeDtypeStruct((num_groups, d), jnp.float32),
            cost_estimate=pl.CostEstimate(
                flops=3 * n * d,
                transcendentals=0,
                bytes_accessed=total_in_bytes + 4 * num_groups * d),
        )(feat1, feat2)
        return jnp.sum(out)

    # ---- Tiled streaming path. ----
    sublane = max(8, 32 // itemsize)            # 8 for f32, 16 for bf16, 32 for int8/fp8
    assert chunk % sublane == 0, "rows per group must be a multiple of the dtype sublane"
    if block_rows is None:
        block_rows = _pick_block_rows(chunk, d, itemsize, sublane, target_block_bytes)
    assert block_rows % sublane == 0 and chunk % block_rows == 0
    num_tiles = chunk // block_rows

    kernel = functools.partial(_center_loss_group_kernel, inv_chunk=inv_chunk)

    grid_spec = pltpu.PrefetchScalarGridSpec(
        num_scalar_prefetch=0,
        grid=(num_groups, num_tiles),
        in_specs=[
            pl.BlockSpec((block_rows, d), lambda g, t, nt=num_tiles: (g * nt + t, 0)),
            pl.BlockSpec((block_rows, d), lambda g, t, nt=num_tiles: (g * nt + t, 0)),
        ],
        # Per-group lane-dense output block, resident across the tile axis only.
        out_specs=pl.BlockSpec((1, 1, d), lambda g, t: (g, 0, 0)),
    )

    # 2 inputs x 2 pipeline buffers + double-buffered (1,1,D) output + headroom.
    pipelined_bytes = 2 * 2 * block_rows * d * itemsize + 2 * d * 4
    vmem_limit = int(min(max(2 * pipelined_bytes + (2 << 20), 16 * 2 ** 20), 48 * 2 ** 20))

    out = pl.pallas_call(
        kernel,
        out_shape=jax.ShapeDtypeStruct((num_groups, 1, d), jnp.float32),
        grid_spec=grid_spec,
        compiler_params=pltpu.CompilerParams(
            # Groups are independent (output revisited only across the tile axis), so the
            # group axis can be sharded across TensorCores on v7x.
            dimension_semantics=("parallel", "arbitrary"),
            vmem_limit_bytes=vmem_limit),
        cost_estimate=pl.CostEstimate(
            flops=3 * n * d,
            transcendentals=0,
            bytes_accessed=total_in_bytes + 4 * num_groups * d),
    )(feat1, feat2)

    # Tiny final reduction (num_groups x D elements) done by XLA in the wrapper.
    return jnp.sum(out)


# --------------------------------------------------------------------------------------
# Pure-JAX reference mirroring the PyTorch module's center/MSE math.
# --------------------------------------------------------------------------------------
def _reference(feat1, feat2, num_groups=4):
    n, _ = feat1.shape
    chunk = n // num_groups
    total = 0.0
    for i in range(num_groups):
        g1 = feat1[i * chunk:(i + 1) * chunk]
        g2 = feat2[i * chunk:(i + 1) * chunk]
        center = jnp.mean(jnp.concatenate([g1, g2], axis=0), axis=0)
        mean1 = jnp.mean(g1, axis=0)
        mean2 = jnp.mean(g2, axis=0)
        total = total + jnp.sum((mean1 - center) ** 2) + jnp.sum((mean2 - center) ** 2)
    return total / 2.0


if __name__ == "__main__":
    key = jax.random.PRNGKey(0)
    k1, k2 = jax.random.split(key)
    N, D = 64, 128          # 4 groups of 16 rows, feature dim 128 (small, lane-aligned)
    feat1 = jax.random.normal(k1, (N, D), dtype=jnp.float32)
    feat2 = jax.random.normal(k2, (N, D), dtype=jnp.float32)

    ref = _reference(feat1, feat2)

    # 1) Small-problem fast path (whole arrays resident in VMEM, single invocation).
    loss_small = center_loss1(feat1, feat2)
    jax.block_until_ready(loss_small)
    assert jnp.allclose(loss_small, ref, rtol=1e-5, atol=1e-5), (loss_small, ref)

    # 2) Tiled streaming path: block_rows=8 -> grid=(4, 2), exercises per-group
    #    accumulation across row tiles and the per-group parallel outputs.
    loss_tiled = center_loss1(feat1, feat2, block_rows=8)
    jax.block_until_ready(loss_tiled)
    assert jnp.allclose(loss_tiled, ref, rtol=1e-5, atol=1e-5), (loss_tiled, ref)

    # 3) bf16 inputs through the tiled path (halved HBM traffic; f32 accumulation
    #    in-kernel; 16-row sublane alignment).
    f1b = feat1.astype(jnp.bfloat16)
    f2b = feat2.astype(jnp.bfloat16)
    loss_bf16 = center_loss1(f1b, f2b, block_rows=16)
    jax.block_until_ready(loss_bf16)
    ref_bf16 = _reference(f1b.astype(jnp.float32), f2b.astype(jnp.float32))
    assert jnp.allclose(loss_bf16, ref_bf16, rtol=2e-2, atol=2e-2), (loss_bf16, ref_bf16)

    print("KERNEL_OK")
</pallas_src>

<mosaic_0001>
module attributes {stable_mosaic.version = 11 : i64} {
  func.func @_center_loss_small_kernel(%arg0: memref<64x128xf32, #tpu.memory_space<vmem>>, %arg1: memref<64x128xf32, #tpu.memory_space<vmem>>, %arg2: memref<4x128xf32, #tpu.memory_space<vmem>>) attributes {dimension_semantics = [], scalar_prefetch = 0 : i64, scratch_operands = 0 : i64, tpu.core_type = #tpu.core_type<tc>} {
    %c0 = arith.constant 0 : index
    %c0_0 = arith.constant 0 : index
    %0 = vector.load %arg0[%c0, %c0_0] : memref<64x128xf32, #tpu.memory_space<vmem>>, vector<64x128xf32>
    %c0_1 = arith.constant 0 : index
    %c0_2 = arith.constant 0 : index
    %1 = vector.load %arg1[%c0_1, %c0_2] : memref<64x128xf32, #tpu.memory_space<vmem>>, vector<64x128xf32>
    %2 = arith.subf %0, %1 : vector<64x128xf32>
    %3 = vector.extract_strided_slice %2 {offsets = [0, 0], sizes = [16, 128], strides = [1, 1]} : vector<64x128xf32> to vector<16x128xf32>
    %cst = arith.constant dense<0.000000e+00> : vector<128xf32>
    %4 = vector.multi_reduction <add>, %3, %cst [0] : vector<16x128xf32> to vector<128xf32>
    %5 = vector.shape_cast %4 : vector<128xf32> to vector<1x128xf32>
    %cst_3 = arith.constant 6.250000e-02 : f32
    %6 = vector.broadcast %cst_3 : f32 to vector<1x128xf32>
    %7 = arith.mulf %5, %6 : vector<1x128xf32>
    %cst_4 = arith.constant 2.500000e-01 : f32
    %8 = vector.broadcast %cst_4 : f32 to vector<1x128xf32>
    %9 = arith.mulf %8, %7 : vector<1x128xf32>
    %10 = arith.mulf %9, %7 : vector<1x128xf32>
    %11 = vector.extract_strided_slice %2 {offsets = [16, 0], sizes = [16, 128], strides = [1, 1]} : vector<64x128xf32> to vector<16x128xf32>
    %cst_5 = arith.constant dense<0.000000e+00> : vector<128xf32>
    %12 = vector.multi_reduction <add>, %11, %cst_5 [0] : vector<16x128xf32> to vector<128xf32>
    %13 = vector.shape_cast %12 : vector<128xf32> to vector<1x128xf32>
    %cst_6 = arith.constant 6.250000e-02 : f32
    %14 = vector.broadcast %cst_6 : f32 to vector<1x128xf32>
    %15 = arith.mulf %13, %14 : vector<1x128xf32>
    %cst_7 = arith.constant 2.500000e-01 : f32
    %16 = vector.broadcast %cst_7 : f32 to vector<1x128xf32>
    %17 = arith.mulf %16, %15 : vector<1x128xf32>
    %18 = arith.mulf %17, %15 : vector<1x128xf32>
    %19 = vector.extract_strided_slice %2 {offsets = [32, 0], sizes = [16, 128], strides = [1, 1]} : vector<64x128xf32> to vector<16x128xf32>
    %cst_8 = arith.constant dense<0.000000e+00> : vector<128xf32>
    %20 = vector.multi_reduction <add>, %19, %cst_8 [0] : vector<16x128xf32> to vector<128xf32>
    %21 = vector.shape_cast %20 : vector<128xf32> to vector<1x128xf32>
    %cst_9 = arith.constant 6.250000e-02 : f32
    %22 = vector.broadcast %cst_9 : f32 to vector<1x128xf32>
    %23 = arith.mulf %21, %22 : vector<1x128xf32>
    %cst_10 = arith.constant 2.500000e-01 : f32
    %24 = vector.broadcast %cst_10 : f32 to vector<1x128xf32>
    %25 = arith.mulf %24, %23 : vector<1x128xf32>
    %26 = arith.mulf %25, %23 : vector<1x128xf32>
    %27 = vector.extract_strided_slice %2 {offsets = [48, 0], sizes = [16, 128], strides = [1, 1]} : vector<64x128xf32> to vector<16x128xf32>
    %cst_11 = arith.constant dense<0.000000e+00> : vector<128xf32>
    %28 = vector.multi_reduction <add>, %27, %cst_11 [0] : vector<16x128xf32> to vector<128xf32>
    %29 = vector.shape_cast %28 : vector<128xf32> to vector<1x128xf32>
    %cst_12 = arith.constant 6.250000e-02 : f32
    %30 = vector.broadcast %cst_12 : f32 to vector<1x128xf32>
    %31 = arith.mulf %29, %30 : vector<1x128xf32>
    %cst_13 = arith.constant 2.500000e-01 : f32
    %32 = vector.broadcast %cst_13 : f32 to vector<1x128xf32>
    %33 = arith.mulf %32, %31 : vector<1x128xf32>
    %34 = arith.mulf %33, %31 : vector<1x128xf32>
    %35 = tpu.concatenate %10, %18, %26, %34 in 0 : vector<1x128xf32>, vector<1x128xf32>, vector<1x128xf32>, vector<1x128xf32> -> vector<4x128xf32>
    %c0_14 = arith.constant 0 : index
    %c0_15 = arith.constant 0 : index
    %36 = vector.load %arg2[%c0_14, %c0_15] : memref<4x128xf32, #tpu.memory_space<vmem>>, vector<4x128xf32>
    tpu.vector_store %arg2[%c0_14, %c0_15], %35 {strides = array<i32>} : memref<4x128xf32, #tpu.memory_space<vmem>>, vector<4x128xf32>,
    return
  }
}

</mosaic_0001>

<bundles_post_ra>
// kernel: tpu_custom_call.1
= control target key start
LH: loop header
LB: loop body
LE: loop exit
PB: predicated region body
PF: predicated region fallthrough
CT: control target
= control target key end

     0   :  { %7 = vsyncpa [#allocation3], 0  ;;  %s260_s0 = inlined_call_operand.hbm [shape: f32[64,128], index: 0, kind: input, shape index: {}]   ;;  %s261_s1 = inlined_call_operand.hbm [shape: f32[64,128], index: 1, kind: input, shape index: {}]   ;;  %s262_s2 = inlined_call_operand.hbm [shape: f32[4,128], index: 2, kind: output, shape index: {}]  }
   0x1   :  { %8 = vsyncpa [#allocation6], 0 }
   0x2   :  { %9 = vsyncpa [#allocation4], 0  ;;  %s204_s9 = smov [#allocation2]   ;;  %s132_s13 = scalar_lea.hbm %s260_s0, 1024 }
   0x3   :  { %s15_s10 = sshll.u32 %s204_s9, 4  ;;  %p133_p0 = scmp.ne.s32.totalorder %s260_s0, %s132_s13  ;;  %s16_s10 = int_to_ptr.vmem [resolvable:$true] %s15_s10 }
   0x4   :  { %p136_p1 = scmp.lt.u32.totalorder %s132_s13, %s260_s0 }
   0x6   :  { %p138_p2 = pnand %p136_p1, %p133_p0 }
   0x8   :  { %141 = shalt.err (!%p138_p2)
}
   0x9   :  { %s142_s18 = scalar_lea.vmem %s16_s10, 1024  ;;  %p147_p4 = scmp.lt.s32.totalorder %s16_s10, %s16_s10 }
   0xa   :  { %p143_p3 = scmp.ne.s32.totalorder %s16_s10, %s142_s18  ;;  %p148_p5 = scmp.lt.s32.totalorder %s142_s18, %s142_s18 }
   0xc   :  { %p149_p6 = por %p148_p5, %p147_p4 }
   0xe   :  { %p150_p7 = pnand %p149_p6, %p143_p3 }
  0x10   :  { %153 = shalt.err (!%p150_p7)
}
  0x11   :  { %s205_s19 = smov 128   ;;  %s206_s20 = smov 8  }
  0x12   :  { %21 = dma.hbm_to_vmem [thread:$0]  %s260_s0, 1024, %s16_s10, [#allocation3], %s205_s19, %s205_s19, %s206_s20  }
  0x13   :  { %s207_s23 = smov [#allocation5]   ;;  %s154_s27 = scalar_lea.hbm %s261_s1, 1024 }
  0x14   :  { %s27_s24 = sshll.u32 %s207_s23, 4  ;;  %p155_p8 = scmp.ne.s32.totalorder %s261_s1, %s154_s27  ;;  %s28_s24 = int_to_ptr.vmem [resolvable:$true] %s27_s24 }
  0x15   :  { %p158_p9 = scmp.lt.u32.totalorder %s154_s27, %s261_s1 }
  0x17   :  { %p160_p10 = pnand %p158_p9, %p155_p8 }
  0x19   :  { %163 = shalt.err (!%p160_p10)
}
  0x1a   :  { %s164_s4 = scalar_lea.vmem %s28_s24, 1024  ;;  %p169_p12 = scmp.lt.s32.totalorder %s28_s24, %s28_s24 }
  0x1b   :  { %p165_p11 = scmp.ne.s32.totalorder %s28_s24, %s164_s4  ;;  %p170_p13 = scmp.lt.s32.totalorder %s164_s4, %s164_s4 }
  0x1d   :  { %p171_p0 = por %p170_p13, %p169_p12 }
  0x1f   :  { %p172_p1 = pnand %p171_p0, %p165_p11 }
  0x21   :  { %175 = shalt.err (!%p172_p1)
}
  0x22   :  { %33 = dma.hbm_to_vmem [thread:$0]  %s261_s1, 1024, %s28_s24, [#allocation6], %s205_s19, %s205_s19, %s206_s20  }
  0x23   :  { %198 = dma.done.wait [#allocation3], 1024  }
  0x24   :  { %199 = vsyncadd [#allocation3], 4294966272 }
  0x25   :  { %200 = dma.done.wait [#allocation6], 1024  }
  0x26   :  { %201 = vsyncadd [#allocation6], 4294966272  ;;  %v40_v0 = vld [vmem:[#allocation2] sm:$0xff]  ;;  %v41_v1 = vld [vmem:[#allocation2 + $0x8] sm:$0xff]  ;;  %vm104_vm0 = vcmask 1040384   ;;  %vm106_vm1 = vcmask 1041408  }
  0x27   :  { %v42_v2 = vld [vmem:[#allocation2 + $0x10] sm:$0xff]  ;;  %v43_v3 = vld [vmem:[#allocation2 + $0x18] sm:$0xff]  ;;  %v44_v4 = vld [vmem:[#allocation2 + $0x20] sm:$0xff]  ;;  %s208_s1 = smov [#allocation7]   ;;  %vm108_vm2 = vcmask 1042432  }
  0x28   :  { %v45_v5 = vld [vmem:[#allocation2 + $0x28] sm:$0xff]  ;;  %v46_v6 = vld [vmem:[#allocation2 + $0x30] sm:$0xff]  ;;  %v47_v7 = vld [vmem:[#allocation2 + $0x38] sm:$0xff]  ;;  %s117_s6 = sshll.u32 %s208_s1, 4  ;;  %s118_s6 = int_to_ptr.vmem [resolvable:$true] %s117_s6 }
  0x29   :  { %v48_v8 = vld [vmem:[#allocation5] sm:$0xff]  ;;  %v49_v9 = vld [vmem:[#allocation5 + $0x8] sm:$0xff]  ;;  %v50_v10 = vld [vmem:[#allocation5 + $0x10] sm:$0xff]  ;;  %s176_s7 = scalar_lea.vmem %s118_s6, 64  ;;  %p181_p3 = scmp.lt.s32.totalorder %s118_s6, %s118_s6 }
  0x2a   :  { %v51_v11 = vld [vmem:[#allocation5 + $0x18] sm:$0xff]  ;;  %v56_v12 = vsub.f32 %v40_v0, %v48_v8  ;;  %v52_v13 = vld [vmem:[#allocation5 + $0x20] sm:$0xff]  ;;  %v53_v14 = vld [vmem:[#allocation5 + $0x28] sm:$0xff]  ;;  %v57_v16 = vsub.f32 %v41_v1, %v49_v9  ;;  %v58_v17 = vsub.f32 %v42_v2, %v50_v10  ;;  %p177_p2 = scmp.ne.s32.totalorder %s118_s6, %s176_s7  ;;  %p182_p4 = scmp.lt.s32.totalorder %s176_s7, %s176_s7 }
  0x2b   :  { %v54_v15 = vld [vmem:[#allocation5 + $0x30] sm:$0xff]  ;;  %v59_v18 = vsub.f32 %v43_v3, %v51_v11  ;;  %v55_v19 = vld [vmem:[#allocation5 + $0x38] sm:$0xff]  ;;  %v60_v20 = vsub.f32 %v44_v4, %v52_v13  ;;  %v61_v21 = vsub.f32 %v45_v5, %v53_v14 }
  0x2c   :  { %v62_v22 = vsub.f32 %v46_v6, %v54_v15  ;;  %v63_v23 = vsub.f32 %v47_v7, %v55_v19  ;;  %v64_v24 = vadd.f32 %v57_v16, %v56_v12  ;;  %p183_p5 = por %p182_p4, %p181_p3 }
  0x2d   :  { %v74_v25 = vadd.f32 %v59_v18, %v58_v17  ;;  %v84_v26 = vadd.f32 %v61_v21, %v60_v20 }
  0x2e   :  { %v65_v27 = vrot.slane %v64_v24, 4  ;;  %v94_v29 = vadd.f32 %v63_v23, %v62_v22  ;;  %p184_p6 = pnand %p183_p5, %p177_p2 }
  0x2f   :  { %v75_v28 = vrot.slane %v74_v25, 4  ;;  %v85_v30 = vrot.slane %v84_v26, 4 }
  0x30   :  { %v66_v31 = vadd.f32 %v65_v27, %v64_v24  ;;  %v95_v33 = vrot.slane %v94_v29, 4 }
  0x31   :  { %v76_v32 = vadd.f32 %v75_v28, %v74_v25  ;;  %v86_v34 = vadd.f32 %v85_v30, %v84_v26 }
  0x32   :  { %v67_v35 = vrot.slane %v66_v31, 2  ;;  %v96_v37 = vadd.f32 %v95_v33, %v94_v29 }
  0x33   :  { %v77_v36 = vrot.slane %v76_v32, 2  ;;  %v87_v38 = vrot.slane %v86_v34, 2 }
  0x34   :  { %v68_v39 = vadd.f32 %v67_v35, %v66_v31  ;;  %v97_v41 = vrot.slane %v96_v37, 2 }
  0x35   :  { %v78_v40 = vadd.f32 %v77_v36, %v76_v32  ;;  %v88_v42 = vadd.f32 %v87_v38, %v86_v34 }
  0x36   :  { %v69_v43 = vrot.slane %v68_v39, 1  ;;  %v98_v45 = vadd.f32 %v97_v41, %v96_v37 }
  0x37   :  { %v79_v44 = vrot.slane %v78_v40, 1  ;;  %v89_v46 = vrot.slane %v88_v42, 1 }
  0x38   :  { %v70_v47 = vadd.f32 %v69_v43, %v68_v39  ;;  %v99_v49 = vrot.slane %v98_v45, 1 }
  0x39   :  { %v80_v48 = vadd.f32 %v79_v44, %v78_v40  ;;  %v90_v50 = vadd.f32 %v89_v46, %v88_v42 }
  0x3a   :  { %v71_v51 = vmul.f32 0.0625, %v70_v47  ;;  %v100_v53 = vadd.f32 %v99_v49, %v98_v45 }
  0x3b   :  { %v81_v52 = vmul.f32 0.0625, %v80_v48  ;;  %v91_v54 = vmul.f32 0.0625, %v90_v50 }
  0x3c   :  { %v72_v55 = vmul.f32 0.25, %v71_v51  ;;  %v101_v57 = vmul.f32 0.0625, %v100_v53 }
  0x3d   :  { %v82_v56 = vmul.f32 0.25, %v81_v52  ;;  %v92_v58 = vmul.f32 0.25, %v91_v54 }
  0x3e   :  { %v73_v59 = vmul.f32 %v72_v55, %v71_v51  ;;  %v102_v61 = vmul.f32 0.25, %v101_v57 }
  0x3f   :  { %v83_v60 = vmul.f32 %v82_v56, %v81_v52  ;;  %v93_v62 = vmul.f32 %v92_v58, %v91_v54 }
  0x40   :  { %v103_v63 = vmul.f32 %v102_v61, %v101_v57 }
  0x41   :  { %v105_v0 = vsel %vm104_vm0, %v73_v59, %v83_v60 }
  0x42   :  { %v107_v1 = vsel %vm106_vm1, %v105_v0, %v93_v62 }
  0x43   :  { %v109_v2 = vsel %vm108_vm2, %v107_v1, %v103_v63 }
  0x44   :  { %110 = vst [vmem:[#allocation7] sm:$0xf] %v109_v2 }
  0x45   :  { %187 = shalt.err (!%p184_p6)
}
  0x46   :  { %s188_s10 = scalar_lea.hbm %s262_s2, 64 }
  0x47   :  { %p189_p7 = scmp.ne.s32.totalorder %s262_s2, %s188_s10  ;;  %p192_p8 = scmp.lt.u32.totalorder %s188_s10, %s262_s2 }
  0x49   :  { %p194_p9 = pnand %p192_p8, %p189_p7 }
  0x4b   :  { %197 = shalt.err (!%p194_p9)
}
  0x4c   :  { %120 = dma.vmem_to_hbm [thread:$0]  %s118_s6, 64, %s262_s2, [#allocation4]  }
  0x4d   :  { %202 = dma.done.wait [#allocation4], 64  }
  0x4e   :  { %203 = vsyncadd [#allocation4], 4294967232 }
  0x4f   :  { %124 = vsyncpa [#allocation3], 1 }
  0x50   :  { %125 = vsyncpa [#allocation6], 1 }
  0x51   :  { %126 = vsyncpa [#allocation4], 1 }

</bundles_post_ra>
